<compile_context>
chip_gen: v6e
topology: v6e:2x2x1
jax: 0.10.0
libtpu: 0.0.40
codegen_flags: <defaults>
</compile_context>

<pallas_src>
import functools
import math

import jax
import jax.numpy as jnp
from jax.experimental import pallas as pl
from jax.experimental.pallas import tpu as pltpu


def _mha_kernel(*refs, n_act, num_heads, head_dim, bt, lq, lk, e_out,
                compute_dtype, approx_recip):
    act_refs = refs[:n_act]
    w_qkv_ref, wo_ref, b_qkv_ref, bo_ref, o_ref = refs[n_act:]

    H, dh = num_heads, head_dim
    E = H * dh
    cdt = compute_dtype

    w_qkv = w_qkv_ref[...]        # (E, 3E)    pre-transposed, q-columns pre-scaled
    wo = wo_ref[...]              # (E, e_out) pre-transposed, zero-padded lane-dense N
    b_qkv = b_qkv_ref[...]        # (1, 3E)    f32, q-part pre-scaled
    bo = bo_ref[...]              # (1, e_out) f32, zero-padded

    # --- fused input projections (batch block folded into the matmul M dim) ---
    x_q = act_refs[0][...].reshape(bt * lq, E).astype(cdt)
    if n_act == 1:
        # self-attention (query is key is value): one fused QKV matmul, N = 3E.
        qkv = jnp.dot(x_q, w_qkv, preferred_element_type=jnp.float32) + b_qkv
        q = qkv[:, :E].astype(cdt)            # cast ONCE (hoisted out of head work)
        k = qkv[:, E:2 * E].astype(cdt)
        v = qkv[:, 2 * E:].astype(cdt)
    elif n_act == 2:
        # cross-attention (key is value): fused KV matmul, N = 2E.
        x_kv = act_refs[1][...].reshape(bt * lk, E).astype(cdt)
        q = (jnp.dot(x_q, w_qkv[:, :E], preferred_element_type=jnp.float32)
             + b_qkv[:, :E]).astype(cdt)
        kv = jnp.dot(x_kv, w_qkv[:, E:],
                     preferred_element_type=jnp.float32) + b_qkv[:, E:]
        k = kv[:, :E].astype(cdt)
        v = kv[:, E:].astype(cdt)
    else:
        # fully general query / key / value sources.
        x_k = act_refs[1][...].reshape(bt * lk, E).astype(cdt)
        x_v = act_refs[2][...].reshape(bt * lk, E).astype(cdt)
        q = (jnp.dot(x_q, w_qkv[:, :E], preferred_element_type=jnp.float32)
             + b_qkv[:, :E]).astype(cdt)
        k = (jnp.dot(x_k, w_qkv[:, E:2 * E], preferred_element_type=jnp.float32)
             + b_qkv[:, E:2 * E]).astype(cdt)
        v = (jnp.dot(x_v, w_qkv[:, 2 * E:], preferred_element_type=jnp.float32)
             + b_qkv[:, 2 * E:]).astype(cdt)

    # --- split heads onto a leading batch axis: H lane slices per tensor (vs
    #     3*H*bt before) + a leading-axis stack; no in-kernel transposes. -----
    def split_heads(t, L):
        parts = [t[:, h * dh:(h + 1) * dh].reshape(bt, L, dh) for h in range(H)]
        return jnp.stack(parts, axis=1).reshape(bt * H, L, dh)

    qh = split_heads(q, lq)                   # (bt*H, Lq, dh)
    kh = split_heads(k, lk)                   # (bt*H, Lk, dh)
    vh = split_heads(v, lk)

    # --- batched scaled-dot-product attention, f32 softmax --------------------
    # transposed-rhs contraction -> no materialized k transpose
    s = jnp.einsum("bqd,bkd->bqk", qh, kh, preferred_element_type=jnp.float32)
    s = s - jnp.max(s, axis=-1, keepdims=True)
    p = jnp.exp(s)
    p = p * pl.reciprocal(jnp.sum(p, axis=-1, keepdims=True), approx=approx_recip)
    ctx = jnp.einsum("bqk,bkd->bqd", p.astype(cdt), vh,
                     preferred_element_type=jnp.float32)      # (bt*H, Lq, dh)

    # --- merge heads (lane concat within one 128-lane tile) and run the
    #     out-projection as a single matmul ------------------------------------
    ctx = ctx.reshape(bt, H, lq, dh)
    ctx = jnp.concatenate([ctx[:, h] for h in range(H)], axis=-1)   # (bt, Lq, E)
    ctx = ctx.reshape(bt * lq, E).astype(cdt)
    out = jnp.dot(ctx, wo, preferred_element_type=jnp.float32) + bo  # (bt*Lq, e_out)

    # Lane-dense store: e_out is a multiple of 128 (padding sliced off outside).
    o_ref[...] = out.reshape(bt, lq, e_out).astype(o_ref.dtype)
    # TODO(synk): key_padding_mask / attn_mask / need_weights paths are not
    # implemented (the reference forward is exercised with the defaults).


def _choose_bt(B, Lq, Lk, E, H, e_out, act_itemsize, out_itemsize):
    """Largest batch tile whose per-step working set (incl. f32 intermediates)
    fits a ~8 MiB budget.  No forced >=2-step split any more: on single-TC
    v5e/v6e extra grid steps only shrink the matmul M dim and add ~0.35us/step."""
    f32 = 4
    per_b = (
        2 * (Lq + 2 * Lk) * E * act_itemsize       # double-buffered input blocks
        + 2 * Lq * e_out * out_itemsize            # double-buffered output block
        + (3 * Lq + 2 * (Lq + 2 * Lk)) * E * f32   # qkv slab + q/k/v + head-split copies
        + 2 * H * Lq * Lk * f32                    # scores + probs (f32)
        + (2 * Lq * E + Lq * e_out) * f32          # ctx, merged ctx, out-proj result
    )
    budget = 8 << 20
    bt = max(1, min(B, budget // max(per_b, 1)))
    if bt < B:
        while B % bt:                              # grid must tile the batch exactly
            bt -= 1
    return bt, per_b


def multihead_attention_pallas(query, key, value, params, num_heads,
                               compute_dtype=jnp.bfloat16):
    """Fused MHA forward (projections + attention + out-projection), one kernel.

    Note: the fused-QKV / fused-KV fast paths key on Python object identity
    (`query is key`, `key is value`); numerically identical but distinct arrays
    take the fully general (still correct) path.
    """
    B, Lq, E = query.shape
    _, Lk, _ = key.shape
    assert E % num_heads == 0
    head_dim = E // num_heads
    scaling = head_dim ** (-0.5)

    wq, bq = params["q_proj"]
    wk, bk = params["k_proj"]
    wv, bv = params["v_proj"]
    wo, bo = params["out_proj"]

    # Pre-transpose to (E_in, E_out), fold the 1/sqrt(dh) scaling into the q
    # projection, stack q/k/v weights into one resident buffer, cast once.
    w_qkv = jnp.concatenate([(wq * scaling).T, wk.T, wv.T],
                            axis=1).astype(compute_dtype)
    b_qkv = jnp.concatenate([bq * scaling, bk, bv]).reshape(1, 3 * E) \
               .astype(jnp.float32)

    # Lane-dense out-projection: pad the N dim (and bias) up to a multiple of
    # 128 so every output row is an unmasked full-lane store; the padding is
    # sliced off after the pallas_call (module I/O contract unchanged).
    e_out = ((E + 127) // 128) * 128
    wo_t = wo.T.astype(compute_dtype)
    bo_r = bo.reshape(1, E).astype(jnp.float32)
    if e_out != E:
        wo_t = jnp.pad(wo_t, ((0, 0), (0, e_out - E)))
        bo_r = jnp.pad(bo_r, ((0, 0), (0, e_out - E)))

    # Fuse projections whose inputs alias.
    if (query is key) and (key is value):
        acts = [query]                       # self-attention: fused QKV
    elif key is value:
        acts = [query, key]                  # cross-attention: fused KV
    else:
        acts = [query, key, value]
    n_act = len(acts)

    bt, per_b = _choose_bt(B, Lq, Lk, E, num_heads, e_out,
                           query.dtype.itemsize, query.dtype.itemsize)
    grid = (B // bt,)

    kernel = functools.partial(
        _mha_kernel, n_act=n_act, num_heads=num_heads, head_dim=head_dim,
        bt=bt, lq=Lq, lk=Lk, e_out=e_out, compute_dtype=compute_dtype,
        approx_recip=(jnp.dtype(compute_dtype) != jnp.dtype(jnp.float32)))

    act_specs = [pl.BlockSpec((bt, a.shape[1], E), lambda b: (b, 0, 0))
                 for a in acts]

    # Grid-invariant weight/bias blocks.  Single-buffer them once they're big
    # enough to matter (saves VMEM + a per-step DMA; most valuable under v7x's
    # 64 MiB physical VMEM).  Falls back to the default double-buffered spec
    # if this JAX build rejects BlockSpec.pipeline_mode.
    w_itemsize = jnp.dtype(compute_dtype).itemsize
    w_bytes = (w_qkv.size + wo_t.size) * w_itemsize + (b_qkv.size + bo_r.size) * 4
    single_buf_consts = w_bytes > (1 << 20)

    def const_spec(shape):
        idx = lambda *_: (0,) * len(shape)
        if single_buf_consts:
            try:
                return pl.BlockSpec(shape, idx, pipeline_mode=pl.Buffered(1))
            except (TypeError, ValueError):
                pass
        return pl.BlockSpec(shape, idx)

    const_specs = [const_spec((E, 3 * E)), const_spec((E, e_out)),
                   const_spec((1, 3 * E)), const_spec((1, e_out))]

    # Only set an explicit VMEM budget once blocks actually get big.  The
    # estimate includes the in-kernel f32 intermediates (qkv/q/k/v, scores,
    # probs, ctx) that activation blocks alone would under-count.
    est = bt * per_b + (1 if single_buf_consts else 2) * w_bytes
    cp_kwargs = dict(dimension_semantics=("parallel",))
    if est > (12 << 20):
        # 48 MiB keeps headroom under v7x's 64 MiB physical VMEM; v5e/v6e
        # (128 MiB physical) could go higher, but 48 MiB is safe everywhere.
        cp_kwargs["vmem_limit_bytes"] = int(min(int(1.5 * est), 48 << 20))
    # TODO(synk): on v7x, gate a CORE_PARALLEL (2-TC) batch split on each core
    # getting >= ~256 matmul rows; plain "parallel" is kept here.

    out_padded = pl.pallas_call(
        kernel,
        out_shape=jax.ShapeDtypeStruct((B, Lq, e_out), query.dtype),
        grid_spec=pltpu.PrefetchScalarGridSpec(
            num_scalar_prefetch=0,
            grid=grid,
            in_specs=act_specs + const_specs,
            out_specs=pl.BlockSpec((bt, Lq, e_out), lambda b: (b, 0, 0)),
        ),
        compiler_params=pltpu.CompilerParams(**cp_kwargs),
    )(*acts, w_qkv, wo_t, b_qkv, bo_r)

    return out_padded[..., :E] if e_out != E else out_padded


def _reference(query, key, value, params, num_heads):
    """Pure-JAX f32 reference mirroring the PyTorch forward."""
    B, Lq, E = query.shape
    _, Lk, _ = key.shape
    dh = E // num_heads
    scaling = dh ** (-0.5)
    wq, bq = params["q_proj"]
    wk, bk = params["k_proj"]
    wv, bv = params["v_proj"]
    wo, bo = params["out_proj"]

    q = (query @ wq.T + bq) * scaling
    k = key @ wk.T + bk
    v = value @ wv.T + bv
    q = q.reshape(B, Lq, num_heads, dh).transpose(0, 2, 1, 3)
    k = k.reshape(B, Lk, num_heads, dh).transpose(0, 2, 1, 3)
    v = v.reshape(B, Lk, num_heads, dh).transpose(0, 2, 1, 3)
    s = jnp.einsum("bhqd,bhkd->bhqk", q, k)
    p = jax.nn.softmax(s.astype(jnp.float32), axis=-1)
    ctx = jnp.einsum("bhqk,bhkd->bhqd", p, v)
    ctx = ctx.transpose(0, 2, 1, 3).reshape(B, Lq, E)
    return ctx @ wo.T + bo


def _xavier_uniform(key, shape, gain=1.0):
    fan_out, fan_in = shape
    a = gain * math.sqrt(6.0 / (fan_in + fan_out))
    return jax.random.uniform(key, shape, jnp.float32, -a, a)


if __name__ == "__main__":
    B, num_heads, head_dim = 2, 4, 8
    E = num_heads * head_dim          # 32
    Lq, Lk = 8, 16

    root = jax.random.PRNGKey(0)
    keys = jax.random.split(root, 12)

    g = 1.0 / math.sqrt(2.0)
    params = {
        "q_proj":   (_xavier_uniform(keys[0], (E, E), gain=g),
                     0.01 * jax.random.normal(keys[1], (E,), jnp.float32)),
        "k_proj":   (_xavier_uniform(keys[2], (E, E), gain=g),
                     0.01 * jax.random.normal(keys[3], (E,), jnp.float32)),
        "v_proj":   (_xavier_uniform(keys[4], (E, E), gain=g),
                     0.01 * jax.random.normal(keys[5], (E,), jnp.float32)),
        "out_proj": (_xavier_uniform(keys[6], (E, E), gain=1.0),
                     jnp.zeros((E,), jnp.float32)),
    }

    x = jax.random.normal(keys[7], (B, Lq, E), jnp.float32)       # self-attn input
    query = jax.random.normal(keys[8], (B, Lq, E), jnp.float32)
    ctx_kv = jax.random.normal(keys[9], (B, Lk, E), jnp.float32)  # shared k/v input
    value2 = jax.random.normal(keys[10], (B, Lk, E), jnp.float32)

    # 1) self-attention (q=k=v): fused QKV matmul, bf16 MXU path.
    out_sa = jax.block_until_ready(
        multihead_attention_pallas(x, x, x, params, num_heads))
    ref_sa = _reference(x, x, x, params, num_heads)
    assert out_sa.shape == (B, Lq, E)
    assert jnp.allclose(out_sa, ref_sa, atol=3e-2, rtol=3e-2), "self-attn mismatch"

    # 2) cross-attention (k and v share their input): fused KV matmul, bf16 path.
    out_ca = jax.block_until_ready(
        multihead_attention_pallas(query, ctx_kv, ctx_kv, params, num_heads))
    ref_ca = _reference(query, ctx_kv, ctx_kv, params, num_heads)
    assert jnp.allclose(out_ca, ref_ca, atol=3e-2, rtol=3e-2), "cross-attn mismatch"

    # 3) fully general q/k/v, f32 compute path (exact-semantics check).
    out_g = jax.block_until_ready(
        multihead_attention_pallas(query, ctx_kv, value2, params, num_heads,
                                   compute_dtype=jnp.float32))
    ref_g = _reference(query, ctx_kv, value2, params, num_heads)
    assert jnp.allclose(out_g, ref_g, atol=1e-4, rtol=1e-4), "general mismatch"

    print("KERNEL_OK")
</pallas_src>

<mosaic_0001>
module attributes {stable_mosaic.version = 11 : i64} {
  func.func @_mha_kernel(%arg0: i32, %arg1: memref<2x8x32xf32, #tpu.memory_space<vmem>>, %arg2: memref<32x96xbf16, #tpu.memory_space<vmem>>, %arg3: memref<32x128xbf16, #tpu.memory_space<vmem>>, %arg4: memref<1x96xf32, #tpu.memory_space<vmem>>, %arg5: memref<1x128xf32, #tpu.memory_space<vmem>>, %arg6: memref<2x8x128xf32, #tpu.memory_space<vmem>>) attributes {dimension_semantics = [#tpu.dimension_semantics<parallel>], iteration_bounds = array<i64: 1>, scalar_prefetch = 0 : i64, scratch_operands = 0 : i64, tpu.core_type = #tpu.core_type<tc>, window_params = [{transform_indices = @transform_0, window_bounds = array<i64: 2, 8, 32>}, {pipeline_mode = #tpu.pipeline_mode<synchronous>, transform_indices = @transform_1, window_bounds = array<i64: 32, 96>}, {pipeline_mode = #tpu.pipeline_mode<synchronous>, transform_indices = @transform_2, window_bounds = array<i64: 32, 128>}, {pipeline_mode = #tpu.pipeline_mode<synchronous>, transform_indices = @transform_3, window_bounds = array<i64: 1, 96>}, {pipeline_mode = #tpu.pipeline_mode<synchronous>, transform_indices = @transform_4, window_bounds = array<i64: 1, 128>}, {transform_indices = @transform_5, window_bounds = array<i64: 2, 8, 128>}]} {
    %c0 = arith.constant 0 : index
    %c0_0 = arith.constant 0 : index
    %0 = vector.load %arg2[%c0, %c0_0] : memref<32x96xbf16, #tpu.memory_space<vmem>>, vector<32x96xbf16>
    %c0_1 = arith.constant 0 : index
    %c0_2 = arith.constant 0 : index
    %1 = vector.load %arg3[%c0_1, %c0_2] : memref<32x128xbf16, #tpu.memory_space<vmem>>, vector<32x128xbf16>
    %c0_3 = arith.constant 0 : index
    %c0_4 = arith.constant 0 : index
    %2 = vector.load %arg4[%c0_3, %c0_4] : memref<1x96xf32, #tpu.memory_space<vmem>>, vector<1x96xf32>
    %c0_5 = arith.constant 0 : index
    %c0_6 = arith.constant 0 : index
    %3 = vector.load %arg5[%c0_5, %c0_6] : memref<1x128xf32, #tpu.memory_space<vmem>>, vector<1x128xf32>
    %c0_7 = arith.constant 0 : index
    %c0_8 = arith.constant 0 : index
    %c0_9 = arith.constant 0 : index
    %4 = vector.load %arg1[%c0_7, %c0_8, %c0_9] : memref<2x8x32xf32, #tpu.memory_space<vmem>>, vector<2x8x32xf32>
    %5 = vector.shape_cast %4 : vector<2x8x32xf32> to vector<16x32xf32>
    %6 = arith.truncf %5 : vector<16x32xf32> to vector<16x32xbf16>
    %cst = arith.constant dense<0.000000e+00> : vector<16x96xf32>
    %7 = tpu.matmul %6, %0, %cst {dimension_numbers = #tpu.dot_dimension_numbers<[1], [0], [0], [1], [0, 0, 1, 1], [], []>} : vector<16x32xbf16>, vector<32x96xbf16>, vector<16x96xf32> -> vector<16x96xf32>
    %8 = vector.broadcast %2 : vector<1x96xf32> to vector<16x96xf32>
    %9 = arith.addf %7, %8 : vector<16x96xf32>
    %10 = vector.extract_strided_slice %9 {offsets = [0, 0], sizes = [16, 32], strides = [1, 1]} : vector<16x96xf32> to vector<16x32xf32>
    %11 = arith.truncf %10 : vector<16x32xf32> to vector<16x32xbf16>
    %12 = vector.extract_strided_slice %9 {offsets = [0, 32], sizes = [16, 32], strides = [1, 1]} : vector<16x96xf32> to vector<16x32xf32>
    %13 = arith.truncf %12 : vector<16x32xf32> to vector<16x32xbf16>
    %14 = vector.extract_strided_slice %9 {offsets = [0, 64], sizes = [16, 32], strides = [1, 1]} : vector<16x96xf32> to vector<16x32xf32>
    %15 = arith.truncf %14 : vector<16x32xf32> to vector<16x32xbf16>
    %16 = vector.extract_strided_slice %11 {offsets = [0, 0], sizes = [16, 8], strides = [1, 1]} : vector<16x32xbf16> to vector<16x8xbf16>
    %17 = vector.shape_cast %16 : vector<16x8xbf16> to vector<2x8x8xbf16>
    %18 = vector.extract_strided_slice %11 {offsets = [0, 8], sizes = [16, 8], strides = [1, 1]} : vector<16x32xbf16> to vector<16x8xbf16>
    %19 = vector.shape_cast %18 : vector<16x8xbf16> to vector<2x8x8xbf16>
    %20 = vector.extract_strided_slice %11 {offsets = [0, 16], sizes = [16, 8], strides = [1, 1]} : vector<16x32xbf16> to vector<16x8xbf16>
    %21 = vector.shape_cast %20 : vector<16x8xbf16> to vector<2x8x8xbf16>
    %22 = vector.extract_strided_slice %11 {offsets = [0, 24], sizes = [16, 8], strides = [1, 1]} : vector<16x32xbf16> to vector<16x8xbf16>
    %23 = vector.shape_cast %22 : vector<16x8xbf16> to vector<2x8x8xbf16>
    %24 = vector.shape_cast %17 : vector<2x8x8xbf16> to vector<2x1x8x8xbf16>
    %25 = vector.shape_cast %19 : vector<2x8x8xbf16> to vector<2x1x8x8xbf16>
    %26 = vector.shape_cast %21 : vector<2x8x8xbf16> to vector<2x1x8x8xbf16>
    %27 = vector.shape_cast %23 : vector<2x8x8xbf16> to vector<2x1x8x8xbf16>
    %28 = tpu.concatenate %24, %25, %26, %27 in 1 : vector<2x1x8x8xbf16>, vector<2x1x8x8xbf16>, vector<2x1x8x8xbf16>, vector<2x1x8x8xbf16> -> vector<2x4x8x8xbf16>
    %29 = vector.shape_cast %28 : vector<2x4x8x8xbf16> to vector<8x8x8xbf16>
    %30 = vector.extract_strided_slice %13 {offsets = [0, 0], sizes = [16, 8], strides = [1, 1]} : vector<16x32xbf16> to vector<16x8xbf16>
    %31 = vector.shape_cast %30 : vector<16x8xbf16> to vector<2x8x8xbf16>
    %32 = vector.extract_strided_slice %13 {offsets = [0, 8], sizes = [16, 8], strides = [1, 1]} : vector<16x32xbf16> to vector<16x8xbf16>
    %33 = vector.shape_cast %32 : vector<16x8xbf16> to vector<2x8x8xbf16>
    %34 = vector.extract_strided_slice %13 {offsets = [0, 16], sizes = [16, 8], strides = [1, 1]} : vector<16x32xbf16> to vector<16x8xbf16>
    %35 = vector.shape_cast %34 : vector<16x8xbf16> to vector<2x8x8xbf16>
    %36 = vector.extract_strided_slice %13 {offsets = [0, 24], sizes = [16, 8], strides = [1, 1]} : vector<16x32xbf16> to vector<16x8xbf16>
    %37 = vector.shape_cast %36 : vector<16x8xbf16> to vector<2x8x8xbf16>
    %38 = vector.shape_cast %31 : vector<2x8x8xbf16> to vector<2x1x8x8xbf16>
    %39 = vector.shape_cast %33 : vector<2x8x8xbf16> to vector<2x1x8x8xbf16>
    %40 = vector.shape_cast %35 : vector<2x8x8xbf16> to vector<2x1x8x8xbf16>
    %41 = vector.shape_cast %37 : vector<2x8x8xbf16> to vector<2x1x8x8xbf16>
    %42 = tpu.concatenate %38, %39, %40, %41 in 1 : vector<2x1x8x8xbf16>, vector<2x1x8x8xbf16>, vector<2x1x8x8xbf16>, vector<2x1x8x8xbf16> -> vector<2x4x8x8xbf16>
    %43 = vector.shape_cast %42 : vector<2x4x8x8xbf16> to vector<8x8x8xbf16>
    %44 = vector.extract_strided_slice %15 {offsets = [0, 0], sizes = [16, 8], strides = [1, 1]} : vector<16x32xbf16> to vector<16x8xbf16>
    %45 = vector.shape_cast %44 : vector<16x8xbf16> to vector<2x8x8xbf16>
    %46 = vector.extract_strided_slice %15 {offsets = [0, 8], sizes = [16, 8], strides = [1, 1]} : vector<16x32xbf16> to vector<16x8xbf16>
    %47 = vector.shape_cast %46 : vector<16x8xbf16> to vector<2x8x8xbf16>
    %48 = vector.extract_strided_slice %15 {offsets = [0, 16], sizes = [16, 8], strides = [1, 1]} : vector<16x32xbf16> to vector<16x8xbf16>
    %49 = vector.shape_cast %48 : vector<16x8xbf16> to vector<2x8x8xbf16>
    %50 = vector.extract_strided_slice %15 {offsets = [0, 24], sizes = [16, 8], strides = [1, 1]} : vector<16x32xbf16> to vector<16x8xbf16>
    %51 = vector.shape_cast %50 : vector<16x8xbf16> to vector<2x8x8xbf16>
    %52 = vector.shape_cast %45 : vector<2x8x8xbf16> to vector<2x1x8x8xbf16>
    %53 = vector.shape_cast %47 : vector<2x8x8xbf16> to vector<2x1x8x8xbf16>
    %54 = vector.shape_cast %49 : vector<2x8x8xbf16> to vector<2x1x8x8xbf16>
    %55 = vector.shape_cast %51 : vector<2x8x8xbf16> to vector<2x1x8x8xbf16>
    %56 = tpu.concatenate %52, %53, %54, %55 in 1 : vector<2x1x8x8xbf16>, vector<2x1x8x8xbf16>, vector<2x1x8x8xbf16>, vector<2x1x8x8xbf16> -> vector<2x4x8x8xbf16>
    %57 = vector.shape_cast %56 : vector<2x4x8x8xbf16> to vector<8x8x8xbf16>
    "tpu.trace_start"() <{level = 10 : i32, message = "bqd,bkd->bqk"}> : () -> ()
    %cst_10 = arith.constant dense<0.000000e+00> : vector<8x8x8xf32>
    %58 = tpu.matmul %29, %43, %cst_10 {dimension_numbers = #tpu.dot_dimension_numbers<[2], [2], [1], [1], [0, 0, 0, 1, 1, 1], [0], [0]>} : vector<8x8x8xbf16>, vector<8x8x8xbf16>, vector<8x8x8xf32> -> vector<8x8x8xf32>
    "tpu.trace_stop"() : () -> ()
    %cst_11 = arith.constant dense<0xFF800000> : vector<8x8xf32>
    %59 = vector.multi_reduction <maximumf>, %58, %cst_11 [2] : vector<8x8x8xf32> to vector<8x8xf32>
    %60 = vector.shape_cast %59 : vector<8x8xf32> to vector<8x8x1xf32>
    %61 = vector.broadcast %60 : vector<8x8x1xf32> to vector<8x8x8xf32>
    %62 = arith.subf %58, %61 : vector<8x8x8xf32>
    %63 = math.exp %62 : vector<8x8x8xf32>
    %cst_12 = arith.constant dense<0.000000e+00> : vector<8x8xf32>
    %64 = vector.multi_reduction <add>, %63, %cst_12 [2] : vector<8x8x8xf32> to vector<8x8xf32>
    %65 = vector.shape_cast %64 : vector<8x8xf32> to vector<8x8x1xf32>
    %66 = tpu.reciprocal %65 {approx = true} : vector<8x8x1xf32> -> vector<8x8x1xf32>
    %67 = vector.broadcast %66 : vector<8x8x1xf32> to vector<8x8x8xf32>
    %68 = arith.mulf %63, %67 : vector<8x8x8xf32>
    %69 = arith.truncf %68 : vector<8x8x8xf32> to vector<8x8x8xbf16>
    "tpu.trace_start"() <{level = 10 : i32, message = "bqk,bkd->bqd"}> : () -> ()
    %cst_13 = arith.constant dense<0.000000e+00> : vector<8x8x8xf32>
    %70 = tpu.matmul %69, %57, %cst_13 {dimension_numbers = #tpu.dot_dimension_numbers<[2], [1], [1], [2], [0, 0, 0, 1, 1, 2], [0], [0]>} : vector<8x8x8xbf16>, vector<8x8x8xbf16>, vector<8x8x8xf32> -> vector<8x8x8xf32>
    "tpu.trace_stop"() : () -> ()
    %71 = vector.shape_cast %70 : vector<8x8x8xf32> to vector<2x4x8x8xf32>
    %72 = vector.extract_strided_slice %71 {offsets = [0, 0, 0, 0], sizes = [2, 1, 8, 8], strides = [1, 1, 1, 1]} : vector<2x4x8x8xf32> to vector<2x1x8x8xf32>
    %73 = vector.shape_cast %72 : vector<2x1x8x8xf32> to vector<2x8x8xf32>
    %74 = vector.extract_strided_slice %71 {offsets = [0, 1, 0, 0], sizes = [2, 1, 8, 8], strides = [1, 1, 1, 1]} : vector<2x4x8x8xf32> to vector<2x1x8x8xf32>
    %75 = vector.shape_cast %74 : vector<2x1x8x8xf32> to vector<2x8x8xf32>
    %76 = vector.extract_strided_slice %71 {offsets = [0, 2, 0, 0], sizes = [2, 1, 8, 8], strides = [1, 1, 1, 1]} : vector<2x4x8x8xf32> to vector<2x1x8x8xf32>
    %77 = vector.shape_cast %76 : vector<2x1x8x8xf32> to vector<2x8x8xf32>
    %78 = vector.extract_strided_slice %71 {offsets = [0, 3, 0, 0], sizes = [2, 1, 8, 8], strides = [1, 1, 1, 1]} : vector<2x4x8x8xf32> to vector<2x1x8x8xf32>
    %79 = vector.shape_cast %78 : vector<2x1x8x8xf32> to vector<2x8x8xf32>
    %80 = tpu.concatenate %73, %75, %77, %79 in 2 : vector<2x8x8xf32>, vector<2x8x8xf32>, vector<2x8x8xf32>, vector<2x8x8xf32> -> vector<2x8x32xf32>
    %81 = vector.shape_cast %80 : vector<2x8x32xf32> to vector<16x32xf32>
    %82 = arith.truncf %81 : vector<16x32xf32> to vector<16x32xbf16>
    %cst_14 = arith.constant dense<0.000000e+00> : vector<16x128xf32>
    %83 = tpu.matmul %82, %1, %cst_14 {dimension_numbers = #tpu.dot_dimension_numbers<[1], [0], [0], [1], [0, 0, 1, 1], [], []>} : vector<16x32xbf16>, vector<32x128xbf16>, vector<16x128xf32> -> vector<16x128xf32>
    %84 = vector.broadcast %3 : vector<1x128xf32> to vector<16x128xf32>
    %85 = arith.addf %83, %84 : vector<16x128xf32>
    %86 = vector.shape_cast %85 : vector<16x128xf32> to vector<2x8x128xf32>
    %c0_15 = arith.constant 0 : index
    %c0_16 = arith.constant 0 : index
    %c0_17 = arith.constant 0 : index
    %87 = vector.load %arg6[%c0_15, %c0_16, %c0_17] : memref<2x8x128xf32, #tpu.memory_space<vmem>>, vector<2x8x128xf32>
    tpu.vector_store %arg6[%c0_15, %c0_16, %c0_17], %86 {strides = array<i32>} : memref<2x8x128xf32, #tpu.memory_space<vmem>>, vector<2x8x128xf32>,
    return
  }
  func.func @transform_0(%arg0: i32) -> (i32, i32, i32) {
    %c0_i32 = arith.constant 0 : i32
    %c0_i32_0 = arith.constant 0 : i32
    %c0_i32_1 = arith.constant 0 : i32
    return %arg0, %c0_i32, %c0_i32_0 : i32, i32, i32
  }
  func.func @transform_1(%arg0: i32) -> (i32, i32) {
    %c0_i32 = arith.constant 0 : i32
    %c0_i32_0 = arith.constant 0 : i32
    %c0_i32_1 = arith.constant 0 : i32
    return %c0_i32, %c0_i32_0 : i32, i32
  }
  func.func @transform_2(%arg0: i32) -> (i32, i32) {
    %c0_i32 = arith.constant 0 : i32
    %c0_i32_0 = arith.constant 0 : i32
    %c0_i32_1 = arith.constant 0 : i32
    return %c0_i32, %c0_i32_0 : i32, i32
  }
  func.func @transform_3(%arg0: i32) -> (i32, i32) {
    %c0_i32 = arith.constant 0 : i32
    %c0_i32_0 = arith.constant 0 : i32
    %c0_i32_1 = arith.constant 0 : i32
    return %c0_i32, %c0_i32_0 : i32, i32
  }
  func.func @transform_4(%arg0: i32) -> (i32, i32) {
    %c0_i32 = arith.constant 0 : i32
    %c0_i32_0 = arith.constant 0 : i32
    %c0_i32_1 = arith.constant 0 : i32
    return %c0_i32, %c0_i32_0 : i32, i32
  }
  func.func @transform_5(%arg0: i32) -> (i32, i32, i32) {
    %c0_i32 = arith.constant 0 : i32
    %c0_i32_0 = arith.constant 0 : i32
    %c0_i32_1 = arith.constant 0 : i32
    return %arg0, %c0_i32, %c0_i32_0 : i32, i32, i32
  }
}

</mosaic_0001>

<bundles_post_ra>
// kernel: tpu_custom_call.1
= control target key start
LH: loop header
LB: loop body
LE: loop exit
PB: predicated region body
PF: predicated region fallthrough
CT: control target
= control target key end

     0   :  { %10 = vsyncpa [#allocation3], 0  ;;  %s1750_s0 = inlined_call_operand.hbm [shape: f32[2,8,32], index: 0, kind: input, shape index: {}]   ;;  %s1751_s1 = inlined_call_operand.hbm [shape: bf16[32,96], index: 1, kind: input, shape index: {}]   ;;  %s1752_s2 = inlined_call_operand.hbm [shape: bf16[32,128], index: 2, kind: input, shape index: {}]   ;;  %s1753_s3 = inlined_call_operand.vmem [shape: f32[1,96], index: 3, kind: input, shape index: {}]   ;;  %s1754_s4 = inlined_call_operand.vmem [shape: f32[1,128], index: 4, kind: input, shape index: {}]   ;;  %s1755_s5 = inlined_call_operand.hbm [shape: f32[2,8,128], index: 5, kind: output, shape index: {}]  }
   0x1   :  { %11 = vsyncpa [#allocation6], 0 }
   0x2   :  { %12 = vsyncpa [#allocation4], 0  ;;  %s1487_s18 = smov [#allocation5]  }
   0x3   :  { %s30_s19 = sshll.u32 %s1487_s18, 4  ;;  %s31_s19 = int_to_ptr.vmem [resolvable:$true] %s30_s19 }
   0x4   :  { %s1409_s20 = scalar_lea.vmem %s31_s19, 256  ;;  %p1414_p1 = scmp.lt.s32.totalorder %s31_s19, %s31_s19 }
   0x5   :  { %p1410_p0 = scmp.ne.s32.totalorder %s31_s19, %s1409_s20  ;;  %p1415_p2 = scmp.lt.s32.totalorder %s1409_s20, %s1409_s20 }
   0x7   :  { %p1416_p3 = por %p1415_p2, %p1414_p1 }
   0x9   :  { %p1417_p4 = pnand %p1416_p3, %p1410_p0 }
   0xb   :  { %1420 = shalt.err (!%p1417_p4)
}
   0xc   :  { %s1488_s21 = smov 64   ;;  %s1489_s22 = smov 4  }
   0xd   :  { %36 = dma.hbm_to_vmem [thread:$0]  %s1751_s1, 256, %s31_s19, [#allocation6], %s1488_s21, %s1488_s21, %s1489_s22  }
   0xe   :  { %s1490_s25 = smov [#allocation2]  }
   0xf   :  { %s18_s26 = sshll.u32 %s1490_s25, 4  ;;  %s19_s26 = int_to_ptr.vmem [resolvable:$true] %s18_s26 }
  0x10   :  { %s1429_s27 = scalar_lea.vmem %s19_s26, 256  ;;  %p1434_p6 = scmp.lt.s32.totalorder %s19_s26, %s19_s26 }
  0x11   :  { %p1430_p5 = scmp.ne.s32.totalorder %s19_s26, %s1429_s27  ;;  %p1435_p7 = scmp.lt.s32.totalorder %s1429_s27, %s1429_s27 }
  0x13   :  { %p1436_p8 = por %p1435_p7, %p1434_p6 }
  0x15   :  { %p1437_p9 = pnand %p1436_p8, %p1430_p5 }
  0x17   :  { %1440 = shalt.err (!%p1437_p9)
}
  0x18   :  { %s1491_s28 = smov 128   ;;  %s1492_s29 = smov 8  }
  0x19   :  { %24 = dma.hbm_to_vmem [thread:$0]  %s1750_s0, 256, %s19_s26, [#allocation3], %s1491_s28, %s1491_s28, %s1492_s29  }
  0x1a   :  { %s1493_s1 = smov [#allocation7]  }
  0x1b   :  { %s42_s7 = sshll.u32 %s1493_s1, 4  ;;  %s43_s7 = int_to_ptr.vmem [resolvable:$true] %s42_s7 }
  0x1c   :  { %s1449_s8 = scalar_lea.vmem %s43_s7, 256  ;;  %p1454_p11 = scmp.lt.s32.totalorder %s43_s7, %s43_s7 }
  0x1d   :  { %p1450_p10 = scmp.ne.s32.totalorder %s43_s7, %s1449_s8  ;;  %p1455_p12 = scmp.lt.s32.totalorder %s1449_s8, %s1449_s8 }
  0x1f   :  { %p1456_p13 = por %p1455_p12, %p1454_p11 }
  0x21   :  { %p1457_p0 = pnand %p1456_p13, %p1450_p10 }
  0x23   :  { %1460 = shalt.err (!%p1457_p0)
}
  0x24   :  { %48 = dma.hbm_to_vmem [thread:$0]  %s1752_s2, 256, %s43_s7, [#allocation6], %s1488_s21, %s1488_s21, %s1489_s22  }
  0x25   :  { %1481 = dma.done.wait [#allocation3], 256  }
  0x26   :  { %1482 = vsyncadd [#allocation3], 4294967040 }
  0x27   :  { %1483 = dma.done.wait [#allocation6], 512  }
  0x28   :  { %1484 = vsyncadd [#allocation6], 4294966784  ;;  %v1494_v0 = vmov 0.0   ;;  %vm1495_vm0 = vmmov 0   ;;  %v1365_v1 = vld [vmem:[#allocation5 + $0x8] sm:$0xff]   ;;  %v1366_v2 = vld [vmem:[#allocation5] sm:$0xff]  }
  0x29   :  { %1222 = vmatprep.subr.bf16.mxu0 %v1494_v0  ;;  %1226 = vmatprep.mubr.msk.bf16.mxu0 %vm1495_vm0, %v1494_v0  ;;  %v73_v3 = vld [vmem:[#allocation2] sm:$0xff]  ;;  %v74_v4 = vld [vmem:[#allocation2 + $0x8] sm:$0xff]  ;;  %vm94_vm1 = vcmask 261120   ;;  %s1496_s11 = smov 104   ;;  %s1497_s12 = smov 120   ;;  %vm159_vm2 = vcmask 64512  }
  0x2a   :  { %1230 = vmatprep.subr.bf16.mxu1 %v1494_v0  ;;  %1232 = vmatprep.mubr.msk.bf16.mxu1 %vm1495_vm0, %v1494_v0  ;;  %v75_v5 = vpack.c.bf16 %v74_v4, %v73_v3  ;;  %v1150_v6 = vld [vmem:[%s1753_s3] ss:$0 sm:$0xff]  ;;  %s1498_s13 = smov 112   ;;  %s1499_s3 = smov 96   ;;  %vm655_vm3 = vcmask 1043456   ;;  %vm1061_vm4 = vcmask 130048  }
  0x2b   :  { %1223 = vmatpush3.bf16.msra.mxu0 %v1365_v1  ;;  %s1500_s14 = smov 16   ;;  %s1501_s15 = smov 24   ;;  %vm1064_vm5 = vcmask 195584  }
  0x2c   :  { %1224 = vmatprep.subr.bf16.mxu0 %v1494_v0  ;;  %s1502_s18 = smov [#allocation8]  }
  0x2d   :  { %s1137_s19 = sshll.u32 %s1502_s18, 4  ;;  %s1138_s19 = int_to_ptr.vmem [resolvable:$true] %s1137_s19 }
  0x2e   :  { %s1461_s20 = scalar_lea.vmem %s1138_s19, 256  ;;  %p1466_p2 = scmp.lt.s32.totalorder %s1138_s19, %s1138_s19 }
  0x2f   :  { %1225 = vmatpush3.bf16.msra.mxu0 %v1366_v2  ;;  %p1462_p1 = scmp.ne.s32.totalorder %s1138_s19, %s1461_s20  ;;  %p1467_p3 = scmp.lt.s32.totalorder %s1461_s20, %s1461_s20 }
  0x30   :  { %1236 = vmatprep.subr.bf16.mxu0 %v1494_v0 }
  0x31   :  { %p1468_p4 = por %p1467_p3, %p1466_p2 }
  0x32   :  { %1227 = vmatmul.mubr.msk.bf16.vlgmr.msra.gmra.mxu0 %vm94_vm1, %v75_v5 }
  0x33   :  { %1238 = vmatprep.mubr.msk.bf16.mxu0 %vm1495_vm0, %v1494_v0  ;;  %p1469_p5 = pnand %p1468_p4, %p1462_p1 }
  0xf2   :  { %v132_v7 = vpop.f32.mrf.mxu0 }
  0xf3   :  { %v133_v8 = vadd.f32 %v1150_v6, %v132_v7 }
  0xf4   :  { %v1228_v9 = vpop.f32.mrf.mxu0 }
  0xf5   :  { %v1182_v10 = vpack.c.bf16 %v133_v8, %v133_v8 }
  0xf6   :  { %v135_v11 = vpop.f32.mrf.mxu0 }
  0xf7   :  { %v136_v12 = vadd.f32 %v1150_v6, %v135_v11  ;;  %153 = vrot.lane.b32.xlu1 %v1182_v10, %s1496_s11  ;;  %145 = vrot.lane.b32.xlu0 %v1182_v10, %s1497_s12 }
  0xf8   :  { %v1229_v13 = vpop.f32.mrf.mxu0 }
  0xf9   :  { %v1563_v14 = vpack.c.bf16 %v136_v12, %v136_v12 }
  0xfb   :  { %149 = vrot.lane.b32.xlu0 %v1182_v10, %s1498_s13  ;;  %147 = vrot.lane.b32.xlu1 %v1563_v14, %s1497_s12 }
  0xff   :  { %151 = vrot.lane.b32.xlu0 %v1563_v14, %s1498_s13  ;;  %155 = vrot.lane.b32.xlu1 %v1563_v14, %s1496_s11 }
 0x103   :  { %157 = vrot.lane.b32.xlu0 %v1182_v10, %s1499_s3 }
 0x169   :  { %v154_v15 = vpop.permute.xlu1 %153  ;;  %v146_v16 = vpop.permute.xlu0 %145 }
 0x16a   :  { %v1568_v17 = vcombine.low %v146_v16, %v146_v16  ;;  %v1571_v20 = vcombine.low %v154_v15, %v154_v15 }
 0x16c   :  { %208 = vrot.lane.b32.xlu1 %v1568_v17, %s1499_s3 }
 0x16d   :  { %v150_v18 = vpop.permute.xlu0 %149  ;;  %v148_v19 = vpop.permute.xlu1 %147 }
 0x16e   :  { %v1573_v21 = vcombine.low %v150_v18, %v150_v18  ;;  %v1577_v23 = vcombine.low %v148_v19, %v148_v19 }
 0x170   :  { %258 = vrot.lane.b32.xlu0 %v1573_v21, %s1499_s3  ;;  %308 = vrot.lane.b32.xlu1 %v1571_v20, %s1499_s3 }
 0x171   :  { %v152_v22 = vpop.permute.xlu0 %151  ;;  %v156_v24 = vpop.permute.xlu1 %155 }
 0x172   :  { %v1581_v26 = vcombine.low %v152_v22, %v152_v22  ;;  %v1583_v27 = vcombine.low %v156_v24, %v156_v24 }
 0x174   :  { %356 = vrot.lane.b32.xlu0 %v1563_v14, %s1499_s3  ;;  %406 = vrot.lane.b32.xlu1 %v1577_v23, %s1499_s3 }
 0x175   :  { %v158_v25 = vpop.permute.xlu0 %157 }
 0x176   :  { %v164_v28 = vsel %vm159_vm2, %v158_v25, 0 }
 0x177   :  { %1231 = vmatpush3.bf16.xpose.msra.mxu1 %v164_v28 }
 0x178   :  { %456 = vrot.lane.b32.xlu0 %v1581_v26, %s1499_s3  ;;  %506 = vrot.lane.b32.xlu1 %v1583_v27, %s1499_s3 }
 0x179   :  { %1242 = vmatprep.subr.bf16.mxu1 %v1494_v0 }
 0x17c   :  { %650 = vrot.lane.b32.xlu1 %v1182_v10, %s1488_s21 }
 0x17e   :  { %1233 = vmatmul.mubr.msk.bf16.vlgmr.msra.gmra.mxu1 %vm159_vm2, %v1182_v10 }
 0x17f   :  { %1244 = vmatprep.mubr.msk.bf16.mxu1 %vm1495_vm0, %v1494_v0 }
 0x1de   :  { %v209_v29 = vpop.permute.xlu1 %208 }
 0x1df   :  { %v214_v30 = vsel %vm159_vm2, %v209_v29, 0 }
 0x1e0   :  { %1237 = vmatpush3.bf16.xpose.msra.mxu0 %v214_v30 }
 0x1e1   :  { %1248 = vmatprep.subr.bf16.mxu0 %v1494_v0 }
 0x1e2   :  { %v259_v31 = vpop.permute.xlu0 %258  ;;  %v309_v33 = vpop.permute.xlu1 %308 }
 0x1e3   :  { %v264_v32 = vsel %vm159_vm2, %v259_v31, 0  ;;  %v314_v34 = vsel %vm159_vm2, %v309_v33, 0 }
 0x1e4   :  { %1243 = vmatpush3.bf16.xpose.msra.mxu1 %v264_v32 }
 0x1e5   :  { %1254 = vmatprep.subr.bf16.mxu1 %v1494_v0 }
 0x1e6   :  { %v357_v35 = vpop.permute.xlu0 %356  ;;  %v407_v37 = vpop.permute.xlu1 %406 }
 0x1e7   :  { %1239 = vmatmul.mubr.msk.bf16.vlgmr.msra.gmra.mxu0 %vm159_vm2, %v146_v16  ;;  %v362_v36 = vsel %vm159_vm2, %v357_v35, 0  ;;  %v412_v38 = vsel %vm159_vm2, %v407_v37, 0 }
 0x1e8   :  { %1249 = vmatpush3.bf16.xpose.msra.mxu0 %v314_v34  ;;  %1250 = vmatprep.mubr.msk.bf16.mxu0 %vm1495_vm0, %v1494_v0 }
 0x1e9   :  { %1260 = vmatprep.subr.bf16.mxu0 %v1494_v0 }
 0x1ea   :  { %v457_v39 = vpop.permute.xlu0 %456  ;;  %v507_v40 = vpop.permute.xlu1 %506 }
 0x1eb   :  { %1245 = vmatmul.mubr.msk.bf16.vlgmr.msra.gmra.mxu1 %vm159_vm2, %v150_v18  ;;  %v462_v41 = vsel %vm159_vm2, %v457_v39, 0  ;;  %v512_v42 = vsel %vm159_vm2, %v507_v40, 0 }
 0x1ec   :  { %1255 = vmatpush3.bf16.xpose.msra.mxu1 %v362_v36  ;;  %1256 = vmatprep.mubr.msk.bf16.mxu1 %vm1495_vm0, %v1494_v0 }
 0x1ed   :  { %1266 = vmatprep.subr.bf16.mxu1 %v1494_v0 }
 0x1ee   :  { %v651_v43 = vpop.permute.xlu1 %650 }
 0x1ef   :  { %1251 = vmatmul.mubr.msk.bf16.vlgmr.msra.gmra.mxu0 %vm159_vm2, %v154_v15  ;;  %v657_v44 = vsel %vm655_vm3, %v651_v43, 0 }
 0x1f0   :  { %1261 = vmatpush3.bf16.xpose.msra.mxu0 %v412_v38  ;;  %1262 = vmatprep.mubr.msk.bf16.mxu0 %vm1495_vm0, %v1494_v0 }
 0x1f1   :  { %1272 = vmatprep.subr.bf16.mxu0 %v1494_v0 }
 0x1f3   :  { %1257 = vmatmul.mubr.msk.bf16.vlgmr.msra.gmra.mxu1 %vm159_vm2, %v1563_v14 }
 0x1f4   :  { %1267 = vmatpush3.bf16.xpose.msra.mxu1 %v462_v41  ;;  %1268 = vmatprep.mubr.msk.bf16.mxu1 %vm1495_vm0, %v1494_v0 }
 0x1f5   :  { %1278 = vmatprep.subr.bf16.mxu1 %v1494_v0 }
 0x1f7   :  { %1263 = vmatmul.mubr.msk.bf16.vlgmr.msra.gmra.mxu0 %vm159_vm2, %v148_v19 }
 0x1f8   :  { %1273 = vmatpush3.bf16.xpose.msra.mxu0 %v512_v42  ;;  %1274 = vmatprep.mubr.msk.bf16.mxu0 %vm1495_vm0, %v1494_v0 }
 0x1f9   :  { %1284 = vmatprep.subr.bf16.mxu0 %v1494_v0 }
 0x1fb   :  { %1269 = vmatmul.mubr.msk.bf16.vlgmr.msra.gmra.mxu1 %vm159_vm2, %v152_v22 }
 0x1fc   :  { %1279 = vmatpush3.bf16.msra.mxu1 %v657_v44  ;;  %1280 = vmatprep.mubr.msk.bf16.mxu1 %vm1495_vm0, %v1494_v0 }
 0x1fd   :  { %1290 = vmatprep.subr.bf16.mxu1 %v1494_v0 }
 0x1ff   :  { %1275 = vmatmul.mubr.msk.bf16.vlgmr.msra.gmra.mxu0 %vm159_vm2, %v156_v24 }
 0x200   :  { %1286 = vmatprep.mubr.msk.bf16.mxu0 %vm1495_vm0, %v1494_v0 }
 0x23e   :  { %v200_v45 = vpop.f32.mrf.mxu1 }
 0x23f   :  { %v554_v46 = vsel %vm159_vm2, %v200_v45, -inf }
 0x240   :  { %555 = vmax.xlane.f32.xlu0 %v554_v46  ;;  %v1234_v47 = vpop.f32.mrf.mxu1 }
 0x242   :  { %v203_v48 = vpop.f32.mrf.mxu1 }
 0x244   :  { %v1235_v49 = vpop.f32.mrf.mxu1 }
 0x2a7   :  { %v250_v50 = vpop.f32.mrf.mxu0 }
 0x2a8   :  { %v557_v51 = vsel %vm159_vm2, %v250_v50, -inf }
 0x2a9   :  { %558 = vmax.xlane.f32.xlu1 %v557_v51  ;;  %v1240_v52 = vpop.f32.mrf.mxu0 }
 0x2ab   :  { %v253_v53 = vpop.f32.mrf.mxu0  ;;  %v300_v54 = vpop.f32.mrf.mxu1 }
 0x2ac   :  { %v560_v55 = vsel %vm159_vm2, %v300_v54, -inf }
 0x2ad   :  { %561 = vmax.xlane.f32.xlu0 %v560_v55  ;;  %v1241_v56 = vpop.f32.mrf.mxu0  ;;  %v1246_v57 = vpop.f32.mrf.mxu1 }
 0x2af   :  { %v303_v58 = vpop.f32.mrf.mxu1  ;;  %v350_v59 = vpop.f32.mrf.mxu0 }
 0x2b0   :  { %v563_v60 = vsel %vm159_vm2, %v350_v59, -inf }
 0x2b1   :  { %v1247_v61 = vpop.f32.mrf.mxu1  ;;  %564 = vmax.xlane.f32.xlu0 %v563_v60  ;;  %v1252_v62 = vpop.f32.mrf.mxu0 }
 0x2b3   :  { %v353_v63 = vpop.f32.mrf.mxu0  ;;  %v1635_v1 = vpop.f32.mrf.mxu1 }
 0x2b4   :  { %v566_v2 = vsel %vm159_vm2, %v1635_v1, -inf }
 0x2b5   :  { %v1258_v3 = vpop.f32.mrf.mxu1  ;;  %567 = vmax.xlane.f32.xlu1 %v566_v2  ;;  %v1253_v4 = vpop.f32.mrf.mxu0 }
 0x2b7   :  { %v401_v5 = vpop.f32.mrf.mxu1  ;;  %v1639_v6 = vpop.f32.mrf.mxu0 }
 0x2b8   :  { %v569_v7 = vsel %vm159_vm2, %v1639_v6, -inf }
 0x2b9   :  { %v1259_v8 = vpop.f32.mrf.mxu1  ;;  %570 = vmax.xlane.f32.xlu0 %v569_v7  ;;  %v1264_v9 = vpop.f32.mrf.mxu0 }
 0x2bb   :  { %v451_v10 = vpop.f32.mrf.mxu0  ;;  %v498_v11 = vpop.f32.mrf.mxu1 }
 0x2bc   :  { %v572_v12 = vsel %vm159_vm2, %v498_v11, -inf }
 0x2bd   :  { %v1270_v13 = vpop.f32.mrf.mxu1  ;;  %573 = vmax.xlane.f32.xlu1 %v572_v12  ;;  %v1265_v15 = vpop.f32.mrf.mxu0 }
 0x2bf   :  { %v501_v16 = vpop.f32.mrf.mxu1  ;;  %v548_v18 = vpop.f32.mrf.mxu0 }
 0x2c0   :  { %v575_v19 = vsel %vm159_vm2, %v548_v18, -inf }
 0x2c1   :  { %v1271_v22 = vpop.f32.mrf.mxu1  ;;  %576 = vmax.xlane.f32.xlu0 %v575_v19  ;;  %v1276_v24 = vpop.f32.mrf.mxu0 }
 0x2c3   :  { %v551_v25 = vpop.f32.mrf.mxu0 }
 0x2c5   :  { %v1277_v28 = vpop.f32.mrf.mxu0 }
 0x2c9   :  { %v556_v29 = vpop.xlane.xlu0 %555 }
 0x2ca   :  { %v578_v30 = vsub.f32 %v200_v45, %v556_v29 }
 0x2cc   :  { %v586_v31 = vmul.f32 1.442695, %v578_v30 }
 0x2ce   :  { %747 = vrot.lane.b32.xlu1 %v1573_v21, %s1488_s21  ;;  %1369 = vpow2.f32 %v586_v31 }
 0x2d2   :  { %795 = vrot.lane.b32.xlu1 %v1571_v20, %s1488_s21 }
 0x2d7   :  { %699 = vrot.lane.b32.xlu0 %v1568_v17, %s1488_s21 }
 0x2db   :  { %v1651_v32 = vpop.eup %1369 }
 0x2dc   :  { %v602_v33 = vsel %vm159_vm2, %v1651_v32, 0.0 }
 0x2f6   :  { %603 = vadd.xlane.f32.xlu1 %v602_v33 }
 0x332   :  { %v559_v34 = vpop.xlane.xlu1 %558 }
 0x333   :  { %v579_v35 = vsub.f32 %v250_v50, %v559_v34 }
 0x335   :  { %v588_v36 = vmul.f32 1.442695, %v579_v35 }
 0x336   :  { %v562_v21 = vpop.xlane.xlu0 %561 }
 0x337   :  { %1371 = vpow2.f32 %v588_v36  ;;  %v580_v37 = vsub.f32 %v300_v54, %v562_v21 }
 0x339   :  { %v590_v20 = vmul.f32 1.442695, %v580_v37 }
 0x33a   :  { %v565_v38 = vpop.xlane.xlu0 %564 }
 0x33b   :  { %1373 = vpow2.f32 %v590_v20  ;;  %v581_v17 = vsub.f32 %v350_v59, %v565_v38 }
 0x33d   :  { %v592_v39 = vmul.f32 1.442695, %v581_v17 }
 0x33e   :  { %v568_v50 = vpop.xlane.xlu1 %567 }
 0x33f   :  { %1375 = vpow2.f32 %v592_v39  ;;  %v582_v51 = vsub.f32 %v1635_v1, %v568_v50 }
 0x341   :  { %v594_v54 = vmul.f32 1.442695, %v582_v51 }
 0x342   :  { %v571_v42 = vpop.xlane.xlu0 %570 }
 0x343   :  { %v583_v53 = vsub.f32 %v1639_v6, %v571_v42  ;;  %1377 = vpow2.f32 %v594_v54 }
 0x344   :  { %v1655_v40 = vpop.eup %1371 }
 0x345   :  { %v605_v41 = vsel %vm159_vm2, %v1655_v40, 0.0  ;;  %v596_v56 = vmul.f32 1.442695, %v583_v53 }
 0x346   :  { %606 = vadd.xlane.f32.xlu0 %v605_v41  ;;  %v574_v52 = vpop.xlane.xlu1 %573 }
 0x347   :  { %v584_v55 = vsub.f32 %v498_v11, %v574_v52  ;;  %1379 = vpow2.f32 %v596_v56 }
 0x348   :  { %v1659_v43 = vpop.eup %1373 }
 0x349   :  { %v608_v44 = vsel %vm159_vm2, %v1659_v43, 0.0  ;;  %v598_v57 = vmul.f32 1.442695, %v584_v55 }
 0x34a   :  { %609 = vadd.xlane.f32.xlu1 %v608_v44  ;;  %v577_v45 = vpop.xlane.xlu0 %576  ;;  %v748_v60 = vpop.permute.xlu1 %747 }
 0x34b   :  { %v585_v58 = vsub.f32 %v548_v18, %v577_v45  ;;  %1381 = vpow2.f32 %v598_v57  ;;  %v753_v9 = vsel %vm655_vm3, %v748_v60, 0 }
 0x34c   :  { %v1663_v46 = vpop.eup %1375 }
 0x34d   :  { %v611_v47 = vsel %vm159_vm2, %v1663_v46, 0.0  ;;  %v600_v59 = vmul.f32 1.442695, %v585_v58 }
 0x34e   :  { %612 = vadd.xlane.f32.xlu0 %v611_v47  ;;  %v700_v48 = vpop.permute.xlu0 %699  ;;  %v796_v61 = vpop.permute.xlu1 %795 }
 0x34f   :  { %v705_v49 = vsel %vm655_vm3, %v700_v48, 0  ;;  %1383 = vpow2.f32 %v600_v59  ;;  %v801_v19 = vsel %vm655_vm3, %v796_v61, 0 }
 0x350   :  { %1285 = vmatpush3.bf16.msra.mxu0 %v705_v49 }
 0x351   :  { %1296 = vmatprep.subr.bf16.mxu0 %v1494_v0 }
 0x35b   :  { %891 = vrot.lane.b32.xlu1 %v1577_v23, %s1488_s21  ;;  %v1675_v23 = vpop.eup %1377 }
 0x35c   :  { %v614_v62 = vsel %vm159_vm2, %v1675_v23, 0.0 }
 0x364   :  { %843 = vrot.lane.b32.xlu0 %v1563_v14, %s1488_s21  ;;  %v1677_v14 = vpop.eup %1379 }
 0x365   :  { %v1681_v63 = vpop.eup %1381  ;;  %v617_v3 = vsel %vm159_vm2, %v1677_v14, 0.0 }
 0x366   :  { %v620_v2 = vsel %vm159_vm2, %v1681_v63, 0.0  ;;  %v1687_v4 = vpop.eup %1383 }
 0x367   :  { %v623_v5 = vsel %vm159_vm2, %v1687_v4, 0.0 }
 0x37f   :  { %615 = vadd.xlane.f32.xlu1 %v614_v62  ;;  %v604_v1 = vpop.xlane.xlu1 %603 }
 0x380   :  { %1385 = vrcp.f32 %v604_v1  ;;  %v1367_v1 = vld [vmem:[#allocation7 + $0x8] sm:$0xff]  }
 0x383   :  { %621 = vadd.xlane.f32.xlu1 %v620_v2  ;;  %618 = vadd.xlane.f32.xlu0 %v617_v3 }
 0x387   :  { %624 = vadd.xlane.f32.xlu0 %v623_v5 }
 0x38d   :  { %v1386_v6 = vpop.eup %1385 }
 0x38e   :  { %v634_v7 = vmul.f32 %v1386_v6, %v1651_v32 }
 0x390   :  { %v642_v8 = vpack.c.bf16 %v634_v7, %v634_v7 }
 0x392   :  { %1281 = vmatmul.mubr.msk.bf16.vlgmr.msra.gmra.mxu1 %vm159_vm2, %v642_v8 }
 0x393   :  { %1291 = vmatpush3.bf16.msra.mxu1 %v753_v9  ;;  %1292 = vmatprep.mubr.msk.bf16.mxu1 %vm1495_vm0, %v1494_v0 }
 0x394   :  { %987 = vrot.lane.b32.xlu1 %v1583_v27, %s1488_s21  ;;  %1302 = vmatprep.subr.bf16.mxu1 %v1494_v0 }
 0x39d   :  { %939 = vrot.lane.b32.xlu0 %v1581_v26, %s1488_s21 }
 0x3cf   :  { %v607_v10 = vpop.xlane.xlu0 %606 }
 0x3d0   :  { %1387 = vrcp.f32 %v607_v10 }
 0x3d3   :  { %v610_v11 = vpop.xlane.xlu1 %609 }
 0x3d4   :  { %1389 = vrcp.f32 %v610_v11 }
 0x3d7   :  { %v613_v12 = vpop.xlane.xlu0 %612  ;;  %v892_v29 = vpop.permute.xlu1 %891 }
 0x3d8   :  { %1391 = vrcp.f32 %v613_v12  ;;  %v897_v31 = vsel %vm655_vm3, %v892_v29, 0 }
 0x3db   :  { %v844_v22 = vpop.permute.xlu0 %843 }
 0x3dc   :  { %v849_v25 = vsel %vm655_vm3, %v844_v22, 0 }
 0x3dd   :  { %v1388_v13 = vpop.eup %1387 }
 0x3de   :  { %v635_v15 = vmul.f32 %v1388_v13, %v1655_v40 }
 0x3e0   :  { %v643_v16 = vpack.c.bf16 %v635_v15, %v635_v15 }
 0x3e1   :  { %v1390_v18 = vpop.eup %1389 }
 0x3e2   :  { %1287 = vmatmul.mubr.msk.bf16.vlgmr.msra.gmra.mxu0 %vm159_vm2, %v643_v16  ;;  %v636_v27 = vmul.f32 %v1390_v18, %v1659_v43 }
 0x3e3   :  { %1297 = vmatpush3.bf16.msra.mxu0 %v801_v19  ;;  %1298 = vmatprep.mubr.msk.bf16.mxu0 %vm1495_vm0, %v1494_v0 }
 0x3e4   :  { %v644_v26 = vpack.c.bf16 %v636_v27, %v636_v27  ;;  %1308 = vmatprep.subr.bf16.mxu0 %v1494_v0 }
 0x3e5   :  { %v1392_v24 = vpop.eup %1391 }
 0x3e6   :  { %1293 = vmatmul.mubr.msk.bf16.vlgmr.msra.gmra.mxu1 %vm159_vm2, %v644_v26  ;;  %v637_v28 = vmul.f32 %v1392_v24, %v1663_v46 }
 0x3e7   :  { %1303 = vmatpush3.bf16.msra.mxu1 %v849_v25  ;;  %1304 = vmatprep.mubr.msk.bf16.mxu1 %vm1495_vm0, %v1494_v0 }
 0x3e8   :  { %v645_v30 = vpack.c.bf16 %v637_v28, %v637_v28  ;;  %1314 = vmatprep.subr.bf16.mxu1 %v1494_v0 }
 0x3ea   :  { %1299 = vmatmul.mubr.msk.bf16.vlgmr.msra.gmra.mxu0 %vm159_vm2, %v645_v30 }
 0x3eb   :  { %1309 = vmatpush3.bf16.msra.mxu0 %v897_v31  ;;  %1310 = vmatprep.mubr.msk.bf16.mxu0 %vm1495_vm0, %v1494_v0 }
 0x3ec   :  { %1320 = vmatprep.subr.bf16.mxu0 %v1494_v0 }
 0x408   :  { %v616_v32 = vpop.xlane.xlu1 %615 }
 0x409   :  { %1393 = vrcp.f32 %v616_v32 }
 0x40c   :  { %v622_v33 = vpop.xlane.xlu1 %621  ;;  %v619_v34 = vpop.xlane.xlu0 %618 }
 0x40d   :  { %1395 = vrcp.f32 %v622_v33 }
 0x40e   :  { %1397 = vrcp.f32 %v619_v34 }
 0x410   :  { %v625_v35 = vpop.xlane.xlu0 %624  ;;  %v988_v41 = vpop.permute.xlu1 %987 }
 0x411   :  { %1399 = vrcp.f32 %v625_v35  ;;  %v993_v45 = vsel %vm655_vm3, %v988_v41, 0 }
 0x414   :  { %v940_v37 = vpop.permute.xlu0 %939 }
 0x415   :  { %v945_v39 = vsel %vm655_vm3, %v940_v37, 0 }
 0x416   :  { %v1394_v36 = vpop.eup %1393 }
 0x417   :  { %v638_v21 = vmul.f32 %v1394_v36, %v1675_v23 }
 0x419   :  { %v646_v20 = vpack.c.bf16 %v638_v21, %v638_v21 }
 0x41a   :  { %v1396_v38 = vpop.eup %1395 }
 0x41b   :  { %v1398_v17 = vpop.eup %1397  ;;  %1305 = vmatmul.mubr.msk.bf16.vlgmr.msra.gmra.mxu1 %vm159_vm2, %v646_v20  ;;  %v640_v42 = vmul.f32 %v1396_v38, %v1681_v63 }
 0x41c   :  { %1315 = vmatpush3.bf16.msra.mxu1 %v945_v39  ;;  %v639_v40 = vmul.f32 %v1398_v17, %v1677_v14  ;;  %1316 = vmatprep.mubr.msk.bf16.mxu1 %vm1495_vm0, %v1494_v0  ;;  %v1178_v17 = vld [vmem:[%s1754_s4] ss:$0 sm:$0xff] }
 0x41d   :  { %1326 = vmatprep.subr.bf16.mxu1 %v1494_v0  ;;  %v648_v46 = vpack.c.bf16 %v640_v42, %v640_v42 }
 0x41e   :  { %v647_v43 = vpack.c.bf16 %v639_v40, %v639_v40  ;;  %v1400_v44 = vpop.eup %1399 }
 0x41f   :  { %v641_v47 = vmul.f32 %v1400_v44, %v1687_v4  ;;  %v1368_v4 = vld [vmem:[#allocation7] sm:$0xff]  }
 0x420   :  { %1311 = vmatmul.mubr.msk.bf16.vlgmr.msra.gmra.mxu0 %vm159_vm2, %v647_v43 }
 0x421   :  { %1321 = vmatpush3.bf16.msra.mxu0 %v993_v45  ;;  %1322 = vmatprep.mubr.msk.bf16.mxu0 %vm1495_vm0, %v1494_v0  ;;  %v649_v48 = vpack.c.bf16 %v641_v47, %v641_v47 }
 0x423   :  { %1317 = vmatmul.mubr.msk.bf16.vlgmr.msra.gmra.mxu1 %vm159_vm2, %v648_v46 }
 0x424   :  { %1330 = vmatprep.mubr.msk.bf16.mxu1 %vm1495_vm0, %v1494_v0  ;;  %1327 = vmatpush3.bf16.msra.mxu1 %v1367_v1 }
 0x425   :  { %1328 = vmatprep.subr.bf16.mxu1 %v1494_v0 }
 0x428   :  { %1323 = vmatmul.mubr.msk.bf16.vlgmr.msra.gmra.mxu0 %vm159_vm2, %v649_v48  ;;  %1329 = vmatpush3.bf16.msra.mxu1 %v1368_v4 }
 0x452   :  { %v693_v49 = vpop.f32.mrf.mxu1 }
 0x454   :  { %v1282_v50 = vpop.f32.mrf.mxu1 }
 0x456   :  { %v696_v51 = vpop.f32.mrf.mxu1 }
 0x458   :  { %v1283_v52 = vpop.f32.mrf.mxu1 }
 0x4a2   :  { %v741_v53 = vpop.f32.mrf.mxu0 }
 0x4a4   :  { %v1288_v54 = vpop.f32.mrf.mxu0 }
 0x4a6   :  { %v744_v55 = vpop.f32.mrf.mxu0  ;;  %v789_v56 = vpop.f32.mrf.mxu1 }
 0x4a8   :  { %v1289_v57 = vpop.f32.mrf.mxu0  ;;  %v1294_v58 = vpop.f32.mrf.mxu1 }
 0x4aa   :  { %v792_v59 = vpop.f32.mrf.mxu1  ;;  %v837_v60 = vpop.f32.mrf.mxu0 }
 0x4ac   :  { %v1295_v23 = vpop.f32.mrf.mxu1  ;;  %v1300_v61 = vpop.f32.mrf.mxu0 }
 0x4ae   :  { %v840_v14 = vpop.f32.mrf.mxu0 }
 0x4b0   :  { %v1301_v62 = vpop.f32.mrf.mxu0 }
 0x4db   :  { %v885_v63 = vpop.f32.mrf.mxu1 }
 0x4dd   :  { %v1306_v2 = vpop.f32.mrf.mxu1 }
 0x4df   :  { %v888_v3 = vpop.f32.mrf.mxu1 }
 0x4e0   :  { %v933_v5 = vpop.f32.mrf.mxu0 }
 0x4e1   :  { %v1350_v6 = vpack.i.bf16 %v933_v5, %v741_v53  ;;  %v1307_v7 = vpop.f32.mrf.mxu1 }
 0x4e2   :  { %v1312_v8 = vpop.f32.mrf.mxu0 }
 0x4e3   :  { %1351 = vrot.lane.b32.xlu0 %v1350_v6, %s1492_s29  ;;  %v981_v9 = vpop.f32.mrf.mxu1 }
 0x4e4   :  { %v936_v10 = vpop.f32.mrf.mxu0  ;;  %v1355_v11 = vpack.i.bf16 %v981_v9, %v789_v56 }
 0x4e5   :  { %v1318_v12 = vpop.f32.mrf.mxu1 }
 0x4e6   :  { %v1313_v13 = vpop.f32.mrf.mxu0  ;;  %1356 = vrot.lane.b32.xlu1 %v1355_v11, %s1500_s14 }
 0x4e7   :  { %v984_v15 = vpop.f32.mrf.mxu1 }
 0x4e8   :  { %v1029_v16 = vpop.f32.mrf.mxu0 }
 0x4e9   :  { %v1360_v18 = vpack.i.bf16 %v1029_v16, %v837_v60  ;;  %v1319_v0 = vpop.f32.mrf.mxu1 }
 0x4ea   :  { %v1324_v19 = vpop.f32.mrf.mxu0 }
 0x4eb   :  { %1361 = vrot.lane.b32.xlu0 %v1360_v18, %s1501_s15 }
 0x4ec   :  { %v1032_v27 = vpop.f32.mrf.mxu0 }
 0x4ee   :  { %v1325_v22 = vpop.f32.mrf.mxu0 }
 0x555   :  { %v1352_v26 = vpop.permute.xlu0 %1351 }
 0x556   :  { %v1354_v25 = vunpack.i.h.bf16 %v1352_v26  ;;  %v1353_v28 = vunpack.i.l.bf16 %v1352_v26 }
 0x558   :  { %v1357_v24 = vpop.permute.xlu1 %1356  ;;  %v1060_v32 = vsel %vm159_vm2, %v885_v63, %v1354_v25  ;;  %v1059_v33 = vsel %vm159_vm2, %v693_v49, %v1353_v28 }
 0x559   :  { %v1359_v29 = vunpack.i.h.bf16 %v1357_v24  ;;  %v1358_v30 = vunpack.i.l.bf16 %v1357_v24 }
 0x55b   :  { %v1062_v36 = vsel %vm1061_vm4, %v1059_v33, %v1358_v30  ;;  %v1063_v21 = vsel %vm1061_vm4, %v1060_v32, %v1359_v29 }
 0x55d   :  { %v1362_v31 = vpop.permute.xlu0 %1361 }
 0x55e   :  { %v1364_v34 = vunpack.i.h.bf16 %v1362_v31  ;;  %v1363_v35 = vunpack.i.l.bf16 %v1362_v31 }
 0x560   :  { %v1066_v37 = vsel %vm1064_vm5, %v1063_v21, %v1364_v34  ;;  %v1065_v20 = vsel %vm1064_vm5, %v1062_v36, %v1363_v35 }
 0x561   :  { %v1067_v38 = vpack.c.bf16 %v1066_v37, %v1065_v20 }
 0x563   :  { %1331 = vmatmul.mubr.msk.bf16.vlgmr.msra.gmra.mxu1 %vm94_vm1, %v1067_v38 }
 0x623   :  { %v1123_v39 = vpop.f32.mrf.mxu1 }
 0x624   :  { %v1124_v40 = vadd.f32 %v1178_v17, %v1123_v39 }
 0x625   :  { %v1332_v41 = vpop.f32.mrf.mxu1 }
 0x626   :  { %1130 = vst [vmem:[#allocation8] sm:$0xff] %v1124_v40 }
 0x627   :  { %v1126_v42 = vpop.f32.mrf.mxu1 }
 0x628   :  { %v1127_v43 = vadd.f32 %v1178_v17, %v1126_v42 }
 0x629   :  { %v1333_v44 = vpop.f32.mrf.mxu1 }
 0x62a   :  { %1131 = vst [vmem:[#allocation8 + $0x8] sm:$0xff] %v1127_v43 }
 0x62b   :  { %1472 = shalt.err (!%p1469_p5)
}
 0x62c   :  { %1143 = dma.vmem_to_hbm [thread:$0]  %s1138_s19, 256, %s1755_s5, [#allocation4], %s1491_s28, %s1491_s28, %s1492_s29  }
 0x62d   :  { %1485 = dma.done.wait [#allocation4], 256  }
 0x62e   :  { %1486 = vsyncadd [#allocation4], 4294967040 }
 0x62f   :  { %1147 = vsyncpa [#allocation3], 1 }
 0x630   :  { %1148 = vsyncpa [#allocation6], 1 }
 0x631   :  { %1149 = vsyncpa [#allocation4], 1 }

</bundles_post_ra>
